<compile_context>
chip_gen: v6e
topology: v6e:2x2x1
jax: 0.10.0
libtpu: 0.0.40
codegen_flags: <defaults>
</compile_context>

<pallas_src>
import functools
import inspect

import jax
import jax.numpy as jnp
from jax.experimental import pallas as pl
from jax.experimental.pallas import tpu as pltpu

_LANE = 128


def _round_up(n, m):
    return ((n + m - 1) // m) * m


def _pad2(a, rows, cols):
    pr, pc = rows - a.shape[0], cols - a.shape[1]
    if pr == 0 and pc == 0:
        return a
    return jnp.pad(a, ((0, pr), (0, pc)))


def _blockspec_supports_pipeline_mode():
    """Explicit feature check (no blanket try/except around real kernel calls)."""
    if not hasattr(pl, "Buffered"):
        return False
    try:
        return "pipeline_mode" in inspect.signature(pl.BlockSpec).parameters
    except (TypeError, ValueError):
        return False


_HAS_PIPELINE_MODE = _blockspec_supports_pipeline_mode()


def init_params(key, d_in, hidden_dims, dtype=jnp.float32):
    """PyTorch-like init: uniform(-1/sqrt(fan_in), 1/sqrt(fan_in)).
    Weights stored pre-transposed as (in, out); biases as (1, out)."""
    dims = [d_in] + list(hidden_dims) + [d_in]
    params = []
    for li in range(len(dims) - 1):
        fan_in, fan_out = dims[li], dims[li + 1]
        key, kw, kb = jax.random.split(key, 3)
        bound = 1.0 / (fan_in ** 0.5)
        w = jax.random.uniform(kw, (fan_in, fan_out), dtype, -bound, bound)
        b = jax.random.uniform(kb, (1, fan_out), dtype, -bound, bound)
        params.append((w, b))
    return params


def prepare_params(params):
    """Pad hidden (internal) dims of the weights/biases to lane multiples ONCE.

    Call at init time; reuse the result across forward calls.  The first layer's
    input width and the last layer's output width stay unpadded (they stream
    from/to HBM at the true width).  Padding with zeros is exact: zero weight
    rows/cols and zero bias entries contribute nothing and ReLU(0) = 0.
    Raw (unpadded) params also work with the kernel; this is purely a layout
    optimization for the resident weights.
    """
    dims = [params[0][0].shape[0]] + [w.shape[1] for w, _ in params]
    pdims = [dims[0]] + [_round_up(d, _LANE) for d in dims[1:-1]] + [dims[-1]]
    prepped = []
    for i, (w, b) in enumerate(params):
        prepped.append((_pad2(w, pdims[i], pdims[i + 1]),
                        _pad2(b.reshape(1, -1), 1, pdims[i + 1])))
    return prepped


def _mlp_kernel(n_layers, f32_activations, *refs):
    """Fused MLP forward: refs = (x, w0, b0, ..., w_{L-1}, b_{L-1}, out)."""
    x_ref = refs[0]
    out_ref = refs[-1]
    param_refs = refs[1:-1]

    act_dtype = jnp.float32 if f32_activations else x_ref.dtype
    h = x_ref[...]
    for i in range(n_layers):
        w = param_refs[2 * i][...]
        b = param_refs[2 * i + 1][...]
        # MXU matmul with f32 accumulation (bf16 inputs run at full MXU rate).
        # Note: for very wide hidden layers (bm * fo * 4B >> 8 MiB) this f32
        # intermediate could be chunked over columns to bound VMEM pressure on
        # v7x; unnecessary at these widths.
        acc = jnp.dot(h, w, preferred_element_type=jnp.float32)
        acc = acc + b.astype(jnp.float32)
        if i < n_layers - 1:
            acc = jnp.maximum(acc, 0.0)      # ReLU on the f32 accumulator
            h = acc.astype(act_dtype)
        else:
            h = acc
    out_ref[...] = h.astype(out_ref.dtype)


def domain_shared_feature_extractor(x, params, *, block_m=256,
                                    f32_activations=False,
                                    single_buffer_weights=False):
    """Fused MLP forward as one Pallas TPU kernel.

    x: (B, d_in) in the compute dtype (f32 or bf16).
    params: list of (W: (in, out), b: (1, out)), ideally from prepare_params().
    """
    B, d_in = x.shape
    n_layers = len(params)
    cdt = x.dtype
    itemsize = jnp.dtype(cdt).itemsize
    sub = 8 if itemsize >= 4 else 16        # sublane packing granularity

    # --- batch tiling ----------------------------------------------------
    # No wrapper-side padding: the trailing partial block is masked by Pallas.
    # Keep >= 2 grid steps when B allows it so the "parallel" axis can split
    # across v7x's 2 TensorCores (v5e/v6e: negligible extra per-step overhead).
    if B < sub:
        bm = B                               # block dim == full array dim (legal)
    else:
        bm = max(sub, min(block_m, _round_up(pl.cdiv(B, 2), sub)))
    grid = (pl.cdiv(B, bm),)

    # --- VMEM budget (explicit; v5e default scoped VMEM is only 16 MiB) ---
    param_bytes = sum(int(w.size) * w.dtype.itemsize + int(b.size) * b.dtype.itemsize
                      for w, b in params)
    max_width = max([d_in] + [int(w.shape[1]) for w, _ in params])
    nbuf_w = 1 if (single_buffer_weights and _HAS_PIPELINE_MODE) else 2
    footprint = (nbuf_w * param_bytes
                 + 2 * bm * d_in * itemsize          # double-buffered input tile
                 + 2 * bm * d_in * itemsize          # double-buffered output tile
                 + 2 * bm * max_width * 4            # f32 accumulator + temps
                 + 2 * bm * max_width * itemsize)    # inter-layer activations
    vmem_bytes = int(1.5 * footprint) + (2 << 20)
    vmem_bytes = max(32 << 20, min(vmem_bytes, 128 << 20))

    # --- advisory cost estimate -------------------------------------------
    flops = 2 * B * sum(int(w.shape[0]) * int(w.shape[1]) for w, _ in params)
    bytes_accessed = int(x.size * itemsize + B * d_in * itemsize + param_bytes)
    cost = pl.CostEstimate(flops=flops, transcendentals=0,
                           bytes_accessed=bytes_accessed)

    # --- specs --------------------------------------------------------------
    # Streamed activations keep the true feature width (no lane padding in HBM).
    in_specs = [pl.BlockSpec((bm, d_in), lambda i: (i, 0))]
    flat_args = [x]
    wmode = pl.Buffered(1) if (single_buffer_weights and _HAS_PIPELINE_MODE) else None
    for w, b in params:
        if wmode is None:
            # Constant index_map => parameters are DMA'd once and stay resident.
            in_specs.append(pl.BlockSpec(w.shape, lambda i: (0, 0)))
            in_specs.append(pl.BlockSpec(b.shape, lambda i: (0, 0)))
        else:
            in_specs.append(pl.BlockSpec(w.shape, lambda i: (0, 0), pipeline_mode=wmode))
            in_specs.append(pl.BlockSpec(b.shape, lambda i: (0, 0), pipeline_mode=wmode))
        flat_args.extend([w, b])
    out_spec = pl.BlockSpec((bm, d_in), lambda i: (i, 0))

    return pl.pallas_call(
        functools.partial(_mlp_kernel, n_layers, f32_activations),
        out_shape=jax.ShapeDtypeStruct((B, d_in), cdt),
        grid=grid,
        in_specs=in_specs,
        out_specs=out_spec,
        compiler_params=pltpu.CompilerParams(
            dimension_semantics=("parallel",),   # megacore split on v7x when grid >= 2
            vmem_limit_bytes=vmem_bytes,
        ),
        cost_estimate=cost,
    )(*flat_args)


def _reference(x, params):
    h = x
    n = len(params)
    for i, (w, b) in enumerate(params):
        h = h @ w + b
        if i < n - 1:
            h = jnp.maximum(h, 0.0)
    return h


if __name__ == "__main__":
    key = jax.random.PRNGKey(0)
    k_x, k_p = jax.random.split(key)

    B, d_in = 20, 32          # B not a multiple of 8 -> exercises masked tail block
    hidden_dims = [64, 32]

    x_f32 = jax.random.normal(k_x, (B, d_in), jnp.float32)
    params_f32 = init_params(k_p, d_in, hidden_dims, jnp.float32)
    ref_f32 = _reference(x_f32, params_f32)

    # Pad parameters ONCE (init-time), reuse across all forward calls.
    prepped_f32 = prepare_params(params_f32)

    # 1) f32, default tile, pre-padded resident weights, unpadded activations.
    out = jax.block_until_ready(domain_shared_feature_extractor(x_f32, prepped_f32))
    assert out.shape == (B, d_in)
    assert jnp.allclose(out, ref_f32, atol=1e-4, rtol=1e-4), "f32 mismatch vs reference"

    # 2) f32, small tile -> multi-step grid with a masked partial tail block.
    out_multi = jax.block_until_ready(
        domain_shared_feature_extractor(x_f32, prepped_f32, block_m=8))
    assert jnp.allclose(out_multi, ref_f32, atol=1e-4, rtol=1e-4), "multi-step grid mismatch"

    # 3) Raw (unpadded) params also run correctly (padding is optional).
    out_raw = jax.block_until_ready(domain_shared_feature_extractor(x_f32, params_f32))
    assert jnp.allclose(out_raw, ref_f32, atol=1e-4, rtol=1e-4), "raw-param path mismatch"

    # 4) bf16 weights/activations (v6e/v7x fast path), f32 MXU accumulation.
    params_bf16 = [(w.astype(jnp.bfloat16), b.astype(jnp.bfloat16)) for w, b in params_f32]
    prepped_bf16 = prepare_params(params_bf16)
    x_bf16 = x_f32.astype(jnp.bfloat16)
    ref_bf16 = _reference(
        x_bf16.astype(jnp.float32),
        [(w.astype(jnp.float32), b.astype(jnp.float32)) for w, b in params_bf16])
    out_bf16 = jax.block_until_ready(
        domain_shared_feature_extractor(x_bf16, prepped_bf16))
    assert jnp.allclose(out_bf16.astype(jnp.float32), ref_bf16, atol=1e-1, rtol=5e-2), \
        "bf16 path mismatch vs reference"

    # 5) bf16 weights with f32 inter-layer activations (tighter accuracy option).
    out_bf16_f32act = jax.block_until_ready(
        domain_shared_feature_extractor(x_bf16, prepped_bf16, f32_activations=True))
    assert jnp.allclose(out_bf16_f32act.astype(jnp.float32), ref_bf16,
                        atol=2e-2, rtol=2e-2), "bf16/f32-activation path mismatch"

    print("KERNEL_OK")
</pallas_src>

<mosaic_0001>
module attributes {stable_mosaic.version = 11 : i64} {
  func.func @_mlp_kernel(%arg0: i32, %arg1: memref<16x32xf32, #tpu.memory_space<vmem>>, %arg2: memref<32x128xf32, #tpu.memory_space<vmem>>, %arg3: memref<1x128xf32, #tpu.memory_space<vmem>>, %arg4: memref<128x128xf32, #tpu.memory_space<vmem>>, %arg5: memref<1x128xf32, #tpu.memory_space<vmem>>, %arg6: memref<128x32xf32, #tpu.memory_space<vmem>>, %arg7: memref<1x32xf32, #tpu.memory_space<vmem>>, %arg8: memref<16x32xf32, #tpu.memory_space<vmem>>) attributes {dimension_semantics = [#tpu.dimension_semantics<parallel>], iteration_bounds = array<i64: 2>, scalar_prefetch = 0 : i64, scratch_operands = 0 : i64, tpu.core_type = #tpu.core_type<tc>, window_params = [{transform_indices = @transform_0, window_bounds = array<i64: 16, 32>}, {pipeline_mode = #tpu.pipeline_mode<synchronous>, transform_indices = @transform_1, window_bounds = array<i64: 32, 128>}, {pipeline_mode = #tpu.pipeline_mode<synchronous>, transform_indices = @transform_2, window_bounds = array<i64: 1, 128>}, {pipeline_mode = #tpu.pipeline_mode<synchronous>, transform_indices = @transform_3, window_bounds = array<i64: 128, 128>}, {pipeline_mode = #tpu.pipeline_mode<synchronous>, transform_indices = @transform_4, window_bounds = array<i64: 1, 128>}, {pipeline_mode = #tpu.pipeline_mode<synchronous>, transform_indices = @transform_5, window_bounds = array<i64: 128, 32>}, {pipeline_mode = #tpu.pipeline_mode<synchronous>, transform_indices = @transform_6, window_bounds = array<i64: 1, 32>}, {transform_indices = @transform_7, window_bounds = array<i64: 16, 32>}]} {
    %c0 = arith.constant 0 : index
    %c0_0 = arith.constant 0 : index
    %0 = vector.load %arg1[%c0, %c0_0] : memref<16x32xf32, #tpu.memory_space<vmem>>, vector<16x32xf32>
    %c0_1 = arith.constant 0 : index
    %c0_2 = arith.constant 0 : index
    %1 = vector.load %arg2[%c0_1, %c0_2] : memref<32x128xf32, #tpu.memory_space<vmem>>, vector<32x128xf32>
    %c0_3 = arith.constant 0 : index
    %c0_4 = arith.constant 0 : index
    %2 = vector.load %arg3[%c0_3, %c0_4] : memref<1x128xf32, #tpu.memory_space<vmem>>, vector<1x128xf32>
    %cst = arith.constant dense<0.000000e+00> : vector<16x128xf32>
    %3 = tpu.matmul %0, %1, %cst {dimension_numbers = #tpu.dot_dimension_numbers<[1], [0], [0], [1], [0, 0, 1, 1], [], []>} : vector<16x32xf32>, vector<32x128xf32>, vector<16x128xf32> -> vector<16x128xf32>
    %4 = vector.broadcast %2 : vector<1x128xf32> to vector<16x128xf32>
    %5 = arith.addf %3, %4 : vector<16x128xf32>
    %cst_5 = arith.constant 0.000000e+00 : f32
    %6 = vector.broadcast %cst_5 : f32 to vector<16x128xf32>
    %7 = arith.maximumf %5, %6 : vector<16x128xf32>
    %c0_6 = arith.constant 0 : index
    %c0_7 = arith.constant 0 : index
    %8 = vector.load %arg4[%c0_6, %c0_7] : memref<128x128xf32, #tpu.memory_space<vmem>>, vector<128x128xf32>
    %c0_8 = arith.constant 0 : index
    %c0_9 = arith.constant 0 : index
    %9 = vector.load %arg5[%c0_8, %c0_9] : memref<1x128xf32, #tpu.memory_space<vmem>>, vector<1x128xf32>
    %cst_10 = arith.constant dense<0.000000e+00> : vector<16x128xf32>
    %10 = tpu.matmul %7, %8, %cst_10 {dimension_numbers = #tpu.dot_dimension_numbers<[1], [0], [0], [1], [0, 0, 1, 1], [], []>} : vector<16x128xf32>, vector<128x128xf32>, vector<16x128xf32> -> vector<16x128xf32>
    %11 = vector.broadcast %9 : vector<1x128xf32> to vector<16x128xf32>
    %12 = arith.addf %10, %11 : vector<16x128xf32>
    %cst_11 = arith.constant 0.000000e+00 : f32
    %13 = vector.broadcast %cst_11 : f32 to vector<16x128xf32>
    %14 = arith.maximumf %12, %13 : vector<16x128xf32>
    %c0_12 = arith.constant 0 : index
    %c0_13 = arith.constant 0 : index
    %15 = vector.load %arg6[%c0_12, %c0_13] : memref<128x32xf32, #tpu.memory_space<vmem>>, vector<128x32xf32>
    %c0_14 = arith.constant 0 : index
    %c0_15 = arith.constant 0 : index
    %16 = vector.load %arg7[%c0_14, %c0_15] : memref<1x32xf32, #tpu.memory_space<vmem>>, vector<1x32xf32>
    %cst_16 = arith.constant dense<0.000000e+00> : vector<16x32xf32>
    %17 = tpu.matmul %14, %15, %cst_16 {dimension_numbers = #tpu.dot_dimension_numbers<[1], [0], [0], [1], [0, 0, 1, 1], [], []>} : vector<16x128xf32>, vector<128x32xf32>, vector<16x32xf32> -> vector<16x32xf32>
    %18 = vector.broadcast %16 : vector<1x32xf32> to vector<16x32xf32>
    %19 = arith.addf %17, %18 : vector<16x32xf32>
    %c0_17 = arith.constant 0 : index
    %c0_18 = arith.constant 0 : index
    %20 = vector.load %arg8[%c0_17, %c0_18] : memref<16x32xf32, #tpu.memory_space<vmem>>, vector<16x32xf32>
    tpu.vector_store %arg8[%c0_17, %c0_18], %19 {strides = array<i32>} : memref<16x32xf32, #tpu.memory_space<vmem>>, vector<16x32xf32>,
    return
  }
  func.func @transform_0(%arg0: i32) -> (i32, i32) {
    %c0_i32 = arith.constant 0 : i32
    %c0_i32_0 = arith.constant 0 : i32
    return %arg0, %c0_i32 : i32, i32
  }
  func.func @transform_1(%arg0: i32) -> (i32, i32) {
    %c0_i32 = arith.constant 0 : i32
    %c0_i32_0 = arith.constant 0 : i32
    %c0_i32_1 = arith.constant 0 : i32
    return %c0_i32, %c0_i32_0 : i32, i32
  }
  func.func @transform_2(%arg0: i32) -> (i32, i32) {
    %c0_i32 = arith.constant 0 : i32
    %c0_i32_0 = arith.constant 0 : i32
    %c0_i32_1 = arith.constant 0 : i32
    return %c0_i32, %c0_i32_0 : i32, i32
  }
  func.func @transform_3(%arg0: i32) -> (i32, i32) {
    %c0_i32 = arith.constant 0 : i32
    %c0_i32_0 = arith.constant 0 : i32
    %c0_i32_1 = arith.constant 0 : i32
    return %c0_i32, %c0_i32_0 : i32, i32
  }
  func.func @transform_4(%arg0: i32) -> (i32, i32) {
    %c0_i32 = arith.constant 0 : i32
    %c0_i32_0 = arith.constant 0 : i32
    %c0_i32_1 = arith.constant 0 : i32
    return %c0_i32, %c0_i32_0 : i32, i32
  }
  func.func @transform_5(%arg0: i32) -> (i32, i32) {
    %c0_i32 = arith.constant 0 : i32
    %c0_i32_0 = arith.constant 0 : i32
    %c0_i32_1 = arith.constant 0 : i32
    return %c0_i32, %c0_i32_0 : i32, i32
  }
  func.func @transform_6(%arg0: i32) -> (i32, i32) {
    %c0_i32 = arith.constant 0 : i32
    %c0_i32_0 = arith.constant 0 : i32
    %c0_i32_1 = arith.constant 0 : i32
    return %c0_i32, %c0_i32_0 : i32, i32
  }
  func.func @transform_7(%arg0: i32) -> (i32, i32) {
    %c0_i32 = arith.constant 0 : i32
    %c0_i32_0 = arith.constant 0 : i32
    return %arg0, %c0_i32 : i32, i32
  }
}

</mosaic_0001>

<bundles_post_ra>
// kernel: tpu_custom_call.1
= control target key start
LH: loop header
LB: loop body
LE: loop exit
PB: predicated region body
PF: predicated region fallthrough
CT: control target
= control target key end

     0   :  { %12 = vsyncpa [#allocation3], 0  ;;  %s1329_s0 = inlined_call_operand.hbm [shape: f32[20,32], index: 0, kind: input, shape index: {}]   ;;  %s1330_s1 = inlined_call_operand.vmem [shape: f32[32,128], index: 1, kind: input, shape index: {}]   ;;  %s1331_s2 = inlined_call_operand.vmem [shape: f32[1,128], index: 2, kind: input, shape index: {}]   ;;  %s1332_s3 = inlined_call_operand.vmem [shape: f32[128,128], index: 3, kind: input, shape index: {}]   ;;  %s1333_s4 = inlined_call_operand.vmem [shape: f32[1,128], index: 4, kind: input, shape index: {}]   ;;  %s1334_s5 = inlined_call_operand.vmem [shape: f32[128,32], index: 5, kind: input, shape index: {}]   ;;  %s1335_s6 = inlined_call_operand.vmem [shape: f32[1,32], index: 6, kind: input, shape index: {}]   ;;  %s1336_s7 = inlined_call_operand.hbm [shape: f32[20,32], index: 7, kind: output, shape index: {}]  }
   0x1   :  { %14 = vsyncpa [#allocation3 + $0x1], 0 }
   0x2   :  { %15 = vsyncpa [#allocation4], 0 }
   0x3   :  { %17 = vsyncpa [#allocation4 + $0x1], 0  ;;  %s1036_s24 = smov 0   ;;  %s1038_s25 = smov 0  }
   0x4   :  { %s1040_s26 = smov 0   ;;  %s1042_s27 = smov 0  }
   0x5 LB: > { %s1057_s28 = sadd.s32 4294967295, %s988_s27   ;;  %s703_s29 = sadd.s32 4294967294, %s988_s27   ;;  %s988_s27 = sphi %s1042_s27, %s1348_s27   ;;  %s984_s26 = sphi %s1040_s26, %s1347_s26   ;;  %s980_s25 = sphi %s1038_s25, %s1346_s25   ;;  %s976_s24 = sphi %s1036_s24, %s1345_s24  }
   0x6   : > { %s1061_s30 = sadd.s32 1, %s988_s27   ;;  %s30_s8 = sadd.s32 1, %s984_s26 }
   0x7   : > { %s27_s9 = ssub.s32 %s988_s27, %s1061_s30  ;;  %p37_p0 = scmp.ne.s32.totalorder %s984_s26, %s980_s25 }
   0x8   : > { %p28_p1 = scmp.eq.s32.totalorder %s27_s9, 0  ;;  %p38_p2 = scmp.eq.s32.totalorder %s988_s27, 0 }
   0x9   : > { %p43_p3 = scmp.ne.s32.totalorder %s980_s25, %s976_s24  ;;  %p44_p4 = scmp.eq.s32.totalorder %s1057_s28, 0 }
   0xa   : > { %s1073_s10 = scalar_select %p28_p1, %s984_s26, %s30_s8  }
   0xb   : > { %p39_p5 = por %p38_p2, %p37_p0  ;;  %p1075_p6 = por %p44_p4, %p43_p3 }
   0xc   : > { %1338 = sst [smem:[#allocation8_spill]] %s1073_s10  ;;  %p193_p7 = scmp.eq.s32.totalorder %s1057_s28, 1 }
   0xd   : > { %p199_p8 = scmp.eq.s32.totalorder %s703_s29, 1  ;;  %p1337_p11 = scmp.ge.s32.totalorder %s988_s27, 2 }
   0xe   : > { %p1080_p9 = por %p193_p7, %p37_p0 }
   0xf   : > { %p1084_p10 = por %p199_p8, %p43_p3  ;;  %233 = sbr.rel (%p1337_p11) target bundleno = 52 (0x34), region = 40 }
  0x11   : > { %s1341_s13 = scalar_select %p1084_p10, 1, 0 }
  0x14   : > { %236 = sbr.rel (!%p39_p5) target bundleno = 52 (0x34), region = 44  ;;  %s237_s14 = sand.u32 (%p39_p5), 1, %s984_s26  }
  0x15   : > { %s707_s15 = sshll.u32 (%p39_p5), %s988_s27, 1  ;;  %s706_s16 = sshll.u32 (%p39_p5), %s237_s14, 4 }
  0x16   : > { %s243_s17 = ssub.s32 (%p39_p5), 3, %s707_s15  ;;  %s1096_s20 = scalar_lea.sflag (%p39_p5), [#allocation3], %s237_s14 }
  0x17   : > { %p244_p12 = scmp.lt.s32.totalorder (%p39_p5), %s243_s17, 2  ;;  %s241_s21 = scalar_lea.vmem (%p39_p5), [#allocation2], %s706_s16 }
  0x19   : > { %s1350_s17 = smov (!%p244_p12, %s243_s17), 2 }
  0x1a   : > { %s1093_s18 = sshll.u32 %s1350_s17, 7 }
  0x1b   : > { %s248_s19 = ssub.s32 256, %s1093_s18 }
  0x1c   : > { %249 = vsyncadd %s1096_s20, %s248_s19  ;;  %p709_p13 = scmp.ne.s32.totalorder %s1093_s18, 0  ;;  %s730_s22 = sshll.u32 %s988_s27, 8 }
  0x1d   : > { %s1104_s8 = scalar_lea.hbm %s1329_s0, %s730_s22  ;;  %s254_s9 = sshll.u32 %s241_s21, 4  ;;  %s1106_s9 = int_to_ptr.vmem [resolvable:$true] %s254_s9 }
  0x1e   : > { %s898_s14 = scalar_lea.hbm %s1104_s8, %s1093_s18  ;;  %s902_s17 = scalar_lea.hbm %s1329_s0, 384 }
  0x1f   : > { %p899_p0 = scmp.ne.s32.totalorder %s1104_s8, %s898_s14  ;;  %p903_p3 = scmp.lt.s32.totalorder %s1104_s8, %s1329_s0 }
  0x20   : > { %p904_p4 = scmp.lt.s32.totalorder %s902_s17, %s898_s14 }
  0x21   : > { %p900_p1 = pnand %p899_p0, %p709_p13 }
  0x22   : > { %p905_p5 = por %p904_p4, %p903_p3 }
  0x23   : > { %p901_p2 = pneg %p900_p1 }
  0x25   : > { %p906_p7 = pnand %p905_p5, %p901_p2 }
  0x27   : > { %909 = shalt.err (!%p906_p7)
}
  0x28   : > { %s910_s21 = scalar_lea.vmem %s1106_s9, %s1093_s18  ;;  %s990_s22 = smov [#allocation2]  }
  0x29   : > { %p911_p8 = scmp.ne.s32.totalorder %s1106_s9, %s910_s21  ;;  %s914_s23 = sshll.u32 %s990_s22, 4  ;;  %s915_s23 = int_to_ptr.vmem [resolvable:$false] %s914_s23 }
  0x2a   : > { %s916_s29 = scalar_lea.vmem %s915_s23, 512  ;;  %p917_p1 = scmp.lt.s32.totalorder %s1106_s9, %s915_s23 }
  0x2b   : > { %p912_p12 = pnand %p911_p8, %p709_p13  ;;  %p918_p11 = scmp.lt.s32.totalorder %s916_s29, %s910_s21 }
  0x2d   : > { %p913_p0 = pneg %p912_p12  ;;  %p919_p10 = por %p918_p11, %p917_p1 }
  0x2f   : > { %p920_p3 = pnand %p919_p10, %p913_p0 }
  0x31   : > { %923 = shalt.err (!%p920_p3)
}
  0x32   : > { %s991_s10 = smov 128   ;;  %s992_s14 = smov 8  }
  0x33   : > { %260 = dma.hbm_to_vmem [thread:$0]  (%p709_p13), %s1104_s8, %s1093_s18, %s1106_s9, %s1096_s20, %s991_s10, %s991_s10, %s992_s14  }
  0x34 PF: > { %p713_p2 = scmp.ge.s32.totalorder %s988_s27, 1  ;;  %p262_p4 = scmp.lt.s32.totalorder %s988_s27, 3 }
  0x36   : > { %p263_p5 = pnand %p713_p2, %p262_p4 }
  0x37   : > { %s1135_s15 = sand.u32 (!%p263_p5), 1, %s980_s25  }
  0x38   : > { %266 = sbr.rel (%p263_p5) target bundleno = 696 (0x2b8), region = 48  ;;  %s714_s16 = sshll.u32 (!%p263_p5), %s1135_s15, 4 }
  0x39   : > { %s269_s17 = scalar_lea.sflag (!%p263_p5), [#allocation3], %s1135_s15  ;;  %s272_s19 = scalar_lea.vmem (!%p263_p5), [#allocation2], %s714_s16 }
  0x3d   : > { %967 = dma.done.wait (%p1075_p6), %s269_s17, 256  }
  0x3e   : > { %969 = vsyncadd (%p1075_p6), %s269_s17, 4294967040  ;;  %vm326_vm0 = vcmask 261120   ;;  %v318_v0 = vld [vmem:[%s1330_s1 + $0x18] sm:$0xff]  ;;  %v317_v1 = vld [vmem:[%s1330_s1 + $0x10] sm:$0xff]  ;;  %s302_s20 = scalar_lea.vmem [#allocation5], %s714_s16  ;;  %s611_s8 = scalar_lea.sflag [#allocation4], %s1135_s15 }
  0x3f   : > { %774 = vmatprep.subr.mxu0 %v318_v0  ;;  %v313_v2 = vld [vmem:[%s272_s19] sm:$0xff]  ;;  %v316_v3 = vld [vmem:[%s1330_s1 + $0x8] sm:$0xff]  ;;  %v425_v4 = vld [vmem:[%s1332_s3 + $0x78] sm:$0xff]  ;;  %s722_s9 = sshll.u32 (%p1080_p9), %s1057_s28, 1 }
  0x40   : > { %775 = vmatpush3.msra.mxu0 %v318_v0  ;;  %782 = vmatprep.mubr.msk.f32.mxu0 %vm326_vm0, %v313_v2  ;;  %v424_v5 = vld [vmem:[%s1332_s3 + $0x70] sm:$0xff]  ;;  %v315_v6 = vld [vmem:[%s1330_s1] sm:$0xff]  ;;  %v423_v7 = vld [vmem:[%s1332_s3 + $0x68] sm:$0xff]  ;;  %s619_s21 = ssub.s32 (%p1080_p9), 3, %s722_s9 }
  0x41   : > { %776 = vmatprep.subr.mxu0 %v317_v1  ;;  %785 = vmatprep.subr.mxu1 %v425_v4  ;;  %v314_v8 = vld [vmem:[%s272_s19 + $0x8] sm:$0xff]  ;;  %v422_v9 = vld [vmem:[%s1332_s3 + $0x60] sm:$0xff]  ;;  %v420_v11 = vld [vmem:[%s1332_s3 + $0x50] sm:$0xff]  ;;  %p620_p6 = scmp.lt.s32.totalorder (%p1080_p9), %s619_s21, 2 }
  0x42   : > { %777 = vmatpush3.msra.mxu0 %v317_v1  ;;  %786 = vmatpush3.msra.mxu1 %v425_v4  ;;  %v421_v10 = vld [vmem:[%s1332_s3 + $0x58] sm:$0xff]  ;;  %v419_v12 = vld [vmem:[%s1332_s3 + $0x48] sm:$0xff]  ;;  %v418_v13 = vld [vmem:[%s1332_s3 + $0x40] sm:$0xff] }
  0x43   : > { %778 = vmatprep.subr.mxu0 %v316_v3  ;;  %787 = vmatprep.subr.mxu1 %v424_v5  ;;  %v417_v14 = vld [vmem:[%s1332_s3 + $0x38] sm:$0xff]  ;;  %v416_v15 = vld [vmem:[%s1332_s3 + $0x30] sm:$0xff]  ;;  %v415_v16 = vld [vmem:[%s1332_s3 + $0x28] sm:$0xff] }
  0x44   : > { %779 = vmatpush3.msra.mxu0 %v316_v3  ;;  %788 = vmatpush3.msra.mxu1 %v424_v5  ;;  %v414_v17 = vld [vmem:[%s1332_s3 + $0x20] sm:$0xff]  ;;  %v413_v18 = vld [vmem:[%s1332_s3 + $0x18] sm:$0xff]  ;;  %v412_v19 = vld [vmem:[%s1332_s3 + $0x10] sm:$0xff] }
  0x45   : > { %780 = vmatprep.subr.mxu0 %v315_v6  ;;  %789 = vmatprep.subr.mxu1 %v423_v7  ;;  %v411_v20 = vld [vmem:[%s1332_s3 + $0x8] sm:$0xff]  ;;  %v410_v21 = vld [vmem:[%s1332_s3] sm:$0xff]  ;;  %v525_v22 = vld [vmem:[%s1334_s5 + $0x78] sm:$0xff] }
  0x46   : > { %781 = vmatpush3.msra.mxu0 %v315_v6  ;;  %790 = vmatpush3.msra.mxu1 %v423_v7  ;;  %v524_v23 = vld [vmem:[%s1334_s5 + $0x70] sm:$0xff]  ;;  %v523_v24 = vld [vmem:[%s1334_s5 + $0x68] sm:$0xff]  ;;  %v522_v25 = vld [vmem:[%s1334_s5 + $0x60] sm:$0xff] }
  0x47   : > { %783 = vmatmul.mubr.msk.f32.vlgmr.msra.gmra.mxu0 %vm326_vm0, %v314_v8  ;;  %791 = vmatprep.subr.mxu1 %v422_v9  ;;  %v521_v26 = vld [vmem:[%s1334_s5 + $0x58] sm:$0xff]  ;;  %v520_v27 = vld [vmem:[%s1334_s5 + $0x50] sm:$0xff]  ;;  %v519_v28 = vld [vmem:[%s1334_s5 + $0x48] sm:$0xff] }
  0x48   : > { %792 = vmatpush3.msra.mxu1 %v422_v9  ;;  %820 = vmatprep.subr.mxu0 %v525_v22  ;;  %v518_v29 = vld [vmem:[%s1334_s5 + $0x40] sm:$0xff]  ;;  %v517_v30 = vld [vmem:[%s1334_s5 + $0x38] sm:$0xff]  ;;  %v516_v31 = vld [vmem:[%s1334_s5 + $0x30] sm:$0xff] }
  0x49   : > { %793 = vmatprep.subr.mxu1 %v421_v10  ;;  %821 = vmatpush3.msra.mxu0 %v525_v22  ;;  %v515_v32 = vld [vmem:[%s1334_s5 + $0x28] sm:$0xff]  ;;  %v514_v33 = vld [vmem:[%s1334_s5 + $0x20] sm:$0xff]  ;;  %v513_v41 = vld [vmem:[%s1334_s5 + $0x18] sm:$0xff] }
  0x4a   : > { %794 = vmatpush3.msra.mxu1 %v421_v10  ;;  %822 = vmatprep.subr.mxu0 %v524_v23  ;;  %v716_v34 = vld [vmem:[%s1331_s2] ss:$0 sm:$0xff]  ;;  %v512_v42 = vld [vmem:[%s1334_s5 + $0x10] sm:$0xff]  ;;  %v511_v43 = vld [vmem:[%s1334_s5 + $0x8] sm:$0xff] }
  0x4b   : > { %795 = vmatprep.subr.mxu1 %v420_v11  ;;  %823 = vmatpush3.msra.mxu0 %v524_v23  ;;  %v510_v44 = vld [vmem:[%s1334_s5] sm:$0xff] }
  0x4c   : > { %796 = vmatpush3.msra.mxu1 %v420_v11  ;;  %824 = vmatprep.subr.mxu0 %v523_v24  ;;  %v719_v45 = vld [vmem:[%s1333_s4] ss:$0 sm:$0xff] }
  0x4d   : > { %797 = vmatprep.subr.mxu1 %v419_v12  ;;  %825 = vmatpush3.msra.mxu0 %v523_v24  ;;  %v720_v52 = vld [vmem:[%s1335_s6] ss:$0 sm:$0xff] }
  0x4e   : > { %798 = vmatpush3.msra.mxu1 %v419_v12  ;;  %826 = vmatprep.subr.mxu0 %v522_v25 }
  0x4f   : > { %799 = vmatprep.subr.mxu1 %v418_v13  ;;  %827 = vmatpush3.msra.mxu0 %v522_v25 }
  0x50   : > { %800 = vmatpush3.msra.mxu1 %v418_v13  ;;  %828 = vmatprep.subr.mxu0 %v521_v26 }
  0x51   : > { %801 = vmatprep.subr.mxu1 %v417_v14  ;;  %829 = vmatpush3.msra.mxu0 %v521_v26 }
  0x52   : > { %802 = vmatpush3.msra.mxu1 %v417_v14  ;;  %830 = vmatprep.subr.mxu0 %v520_v27 }
  0x53   : > { %803 = vmatprep.subr.mxu1 %v416_v15  ;;  %831 = vmatpush3.msra.mxu0 %v520_v27 }
  0x54   : > { %804 = vmatpush3.msra.mxu1 %v416_v15  ;;  %832 = vmatprep.subr.mxu0 %v519_v28 }
  0x55   : > { %805 = vmatprep.subr.mxu1 %v415_v16  ;;  %833 = vmatpush3.msra.mxu0 %v519_v28 }
  0x56   : > { %806 = vmatpush3.msra.mxu1 %v415_v16  ;;  %834 = vmatprep.subr.mxu0 %v518_v29 }
  0x57   : > { %807 = vmatprep.subr.mxu1 %v414_v17  ;;  %835 = vmatpush3.msra.mxu0 %v518_v29 }
  0x58   : > { %808 = vmatpush3.msra.mxu1 %v414_v17  ;;  %836 = vmatprep.subr.mxu0 %v517_v30 }
  0x59   : > { %809 = vmatprep.subr.mxu1 %v413_v18  ;;  %837 = vmatpush3.msra.mxu0 %v517_v30 }
  0x5a   : > { %810 = vmatpush3.msra.mxu1 %v413_v18  ;;  %838 = vmatprep.subr.mxu0 %v516_v31 }
  0x5b   : > { %811 = vmatprep.subr.mxu1 %v412_v19  ;;  %839 = vmatpush3.msra.mxu0 %v516_v31 }
  0x5c   : > { %812 = vmatpush3.msra.mxu1 %v412_v19  ;;  %840 = vmatprep.subr.mxu0 %v515_v32 }
  0x5d   : > { %813 = vmatprep.subr.mxu1 %v411_v20  ;;  %841 = vmatpush3.msra.mxu0 %v515_v32 }
  0x5e   : > { %814 = vmatpush3.msra.mxu1 %v411_v20  ;;  %842 = vmatprep.subr.mxu0 %v514_v33 }
  0x5f   : > { %815 = vmatprep.subr.mxu1 %v410_v21  ;;  %843 = vmatpush3.msra.mxu0 %v514_v33 }
  0x60   : > { %816 = vmatpush3.msra.mxu1 %v410_v21  ;;  %844 = vmatprep.subr.mxu0 %v513_v41 }
  0x61   : > { %845 = vmatpush3.msra.mxu0 %v513_v41 }
  0x62   : > { %846 = vmatprep.subr.mxu0 %v512_v42 }
  0x63   : > { %847 = vmatpush3.msra.mxu0 %v512_v42 }
  0x64   : > { %848 = vmatprep.subr.mxu0 %v511_v43 }
  0x65   : > { %849 = vmatpush3.msra.mxu0 %v511_v43 }
  0x66   : > { %850 = vmatprep.subr.mxu0 %v510_v44 }
  0x67   : > { %851 = vmatpush3.msra.mxu0 %v510_v44 }
 0x107   : > { %v784_v35 = vpop.f32.mrf.mxu0 }
 0x108   : > { %v405_v36 = vadd.f32 %v784_v35, %v716_v34 }
 0x109   : > { %v399_v37 = vpop.f32.mrf.mxu0 }
 0x10a   : > { %v400_v38 = vadd.f32 %v716_v34, %v399_v37  ;;  %v409_v40 = vmax.f32 %v405_v36, 0.0 }
 0x10c   : > { %v408_v39 = vmax.f32 %v400_v38, 0.0 }
 0x10e   : > { %817 = vmatprep.mubr.f32.mxu1 %v408_v39 }
 0x10f   : > { %818 = vmatmul.mubr.f32.vlgmr.msra.gmra.mxu1 %v409_v40 }
 0x1cf   : > { %v819_v46 = vpop.f32.mrf.mxu1 }
 0x1d0   : > { %v505_v47 = vadd.f32 %v819_v46, %v719_v45 }
 0x1d1   : > { %v499_v48 = vpop.f32.mrf.mxu1 }
 0x1d2   : > { %v500_v49 = vadd.f32 %v719_v45, %v499_v48  ;;  %v509_v51 = vmax.f32 %v505_v47, 0.0 }
 0x1d4   : > { %v508_v50 = vmax.f32 %v500_v49, 0.0 }
 0x1d6   : > { %852 = vmatprep.mubr.f32.mxu0 %v508_v50 }
 0x1d7   : > { %853 = vmatmul.mubr.f32.vlgmr.msra.gmra.mxu0 %v509_v51 }
 0x297   : > { %v854_v53 = vpop.f32.mrf.mxu0 }
 0x298   : > { %v605_v54 = vadd.f32 %v854_v53, %v720_v52  ;;  %617 = sbr.rel (!%p1080_p9) target bundleno = 696 (0x2b8), region = 56 }
 0x299   : > { %v599_v55 = vpop.f32.mrf.mxu0 }
 0x29a   : > { %609 = vst.msk [vmem:[%s302_s20 + $0x8] sm:$0xff] %vm326_vm0, %v605_v54  ;;  %v600_v56 = vadd.f32 %v720_v52, %v599_v55 }
 0x29c   : > { %608 = vst.msk [vmem:[%s302_s20] sm:$0xff] %vm326_vm0, %v600_v56 }
 0x29d   : > { %s1352_s21 = smov (!%p620_p6, %s619_s21), 2 }
 0x29e   : > { %s1272_s22 = sshll.u32 %s1352_s21, 7 }
 0x29f   : > { %s624_s11 = ssub.s32 256, %s1272_s22 }
 0x2a0   : > { %625 = vsyncadd %s611_s8, %s624_s11  ;;  %p724_p10 = scmp.ne.s32.totalorder %s1272_s22, 0  ;;  %s731_s16 = sshll.u32 %s1057_s28, 8 }
 0x2a1   : > { %s1282_s19 = scalar_lea.hbm %s1336_s7, %s731_s16  ;;  %s630_s29 = sshll.u32 %s302_s20, 4  ;;  %s1284_s29 = int_to_ptr.vmem [resolvable:$true] %s630_s29 }
 0x2a2   : > { %s924_s10 = scalar_lea.vmem %s1284_s29, %s1272_s22  ;;  %s993_s14 = smov [#allocation5]  }
 0x2a3   : > { %p925_p9 = scmp.ne.s32.totalorder %s1284_s29, %s924_s10  ;;  %s928_s17 = sshll.u32 %s993_s14, 4  ;;  %s929_s17 = int_to_ptr.vmem [resolvable:$false] %s928_s17 }
 0x2a4   : > { %s930_s28 = scalar_lea.vmem %s929_s17, 512  ;;  %p931_p7 = scmp.lt.s32.totalorder %s1284_s29, %s929_s17 }
 0x2a5   : > { %p926_p11 = pnand %p925_p9, %p724_p10  ;;  %p932_p8 = scmp.lt.s32.totalorder %s930_s28, %s924_s10 }
 0x2a7   : > { %p927_p13 = pneg %p926_p11  ;;  %p933_p12 = por %p932_p8, %p931_p7 }
 0x2a9   : > { %p934_p0 = pnand %p933_p12, %p927_p13 }
 0x2ab   : > { %937 = shalt.err (!%p934_p0)
}
 0x2ac   : > { %s938_s18 = scalar_lea.hbm %s1282_s19, %s1272_s22  ;;  %s942_s21 = scalar_lea.hbm %s1336_s7, 384 }
 0x2ad   : > { %p939_p1 = scmp.ne.s32.totalorder %s1282_s19, %s938_s18  ;;  %p943_p4 = scmp.lt.s32.totalorder %s1282_s19, %s1336_s7 }
 0x2ae   : > { %p944_p5 = scmp.lt.s32.totalorder %s942_s21, %s938_s18 }
 0x2af   : > { %p940_p3 = pnand %p939_p1, %p724_p10 }
 0x2b0   : > { %p945_p6 = por %p944_p5, %p943_p4 }
 0x2b1   : > { %p941_p2 = pneg %p940_p3 }
 0x2b3   : > { %p946_p9 = pnand %p945_p6, %p941_p2 }
 0x2b5   : > { %949 = shalt.err (!%p946_p9)
}
 0x2b6   : > { %s994_s12 = smov 128   ;;  %s995_s23 = smov 8  }
 0x2b7   : > { %636 = dma.vmem_to_hbm [thread:$0]  (%p724_p10), %s1284_s29, %s1272_s22, %s1282_s19, %s611_s8, %s994_s12, %s994_s12, %s995_s23  }
 0x2b8 PF: > { %s645_s10 = sand.u32 1, %s976_s24   ;;  %p1342_p11 = scmp.ne.s32.totalorder %s1341_s13, 0 }
 0x2b9   : > { %p1343_p13 = scmp.ge.s32.totalorder %s988_s27, 2  ;;  %s646_s14 = scalar_lea.sflag [#allocation4], %s645_s10 }
 0x2bb   : > { %p858_p7 = pnand %p1343_p13, %p1342_p11 }
 0x2bd   : > { %p859_p8 = pneg %p858_p7 }
 0x2bf   : > { %971 = dma.done.wait (%p859_p8), %s646_s14, 256  }
 0x2c0   : > { %973 = vsyncadd (%p859_p8), %s646_s14, 4294967040  ;;  %s1344_s17 = sld [smem:[#allocation8_spill]]  ;;  %p20_p12 = scmp.ge.s32.totalorder %s1061_s30, 4  }
 0x2c1   : > { %s1345_s24 = smov %s980_s25  ;;  %s1346_s25 = smov %s984_s26 }
 0x2c2   : > { %s1348_s27 = smov %s1061_s30  ;;  %22 = sbr.rel (!%p20_p12) target bundleno = 5 (0x5), region = 93 }
 0x2c6   : > { %s1347_s26 = smov %s1344_s17 }
 0x2c7   :  { %651 = vsyncpa [#allocation3], 1 }
 0x2c8   :  { %653 = vsyncpa [#allocation3 + $0x1], 1 }
 0x2c9   :  { %654 = vsyncpa [#allocation4], 1 }
 0x2ca   :  { %656 = vsyncpa [#allocation4 + $0x1], 1 }

</bundles_post_ra>
